<compile_context>
chip_gen: v6e
topology: v6e:2x2x1
jax: 0.10.0
libtpu: 0.0.40
codegen_flags: <defaults>
</compile_context>

<pallas_src>
import functools

import jax
import jax.numpy as jnp
from jax import lax
from jax.experimental import pallas as pl
from jax.experimental.pallas import tpu as pltpu


# ---------------------------------------------------------------------------
# Sizing helpers (all trace-time / static)
# ---------------------------------------------------------------------------
def _round_up(x, m):
    return ((x + m - 1) // m) * m


def _vmem_capacity():
    """Physical VMEM bytes of the current chip (conservative fallback)."""
    try:
        return int(pltpu.get_tpu_info().vmem_capacity_bytes)
    except Exception:
        return 64 * 1024 * 1024  # v7x-sized conservative default


def _choose_tk(n, m, itemsize):
    """Pick the K tile width so the double-buffered feature stream plus the
    resident (N,N) blocks fit comfortably in this generation's VMEM."""
    cap = _vmem_capacity()
    n_sub = _round_up(n, 8)
    n_lane = _round_up(n, 128)
    resident = 2 * 2 * n_sub * n_lane * 4        # gram out + target, 2 bufs, f32
    budget = int(cap * 0.70) - resident - (4 << 20)
    budget = max(budget, 2 << 20)
    tk = budget // max(1, 2 * n_sub * itemsize)  # 2 = double-buffered input
    tk = max(128, (tk // 128) * 128)
    if tk >= m:
        return int(m)                            # single K step, full (ragged-free) dim
    return int(tk)


def _vmem_limit_bytes(n, tk, itemsize, n_resident_nn_blocks):
    n_sub = _round_up(n, 8)
    n_lane = _round_up(n, 128)
    tk_lane = _round_up(tk, 128)
    need = (2 * n_sub * tk_lane * itemsize                       # streamed F tiles
            + n_resident_nn_blocks * 2 * n_sub * n_lane * 4)     # resident (N,N) blocks
    cap = _vmem_capacity()
    limit = int(need * 1.25) + (4 << 20)
    return int(min(max(limit, 16 << 20), int(cap * 0.9)))


def _masked_tile(feats_ref, k, tk, m_total):
    """Load the (N, TK) tile; zero columns past the true M on the ragged tail."""
    f = feats_ref[...]
    if m_total % tk:  # static: only emit the mask when a ragged tail exists
        col = k * tk + lax.broadcasted_iota(jnp.int32, f.shape, dimension=1)
        f = jnp.where(col < m_total, f, jnp.zeros_like(f))
    return f


def _partial_gram(f):
    """F_tile @ F_tile^T without materializing a transpose (MXU-native)."""
    return lax.dot_general(
        f, f,
        dimension_numbers=(((1,), (1,)), ((), ())),
        preferred_element_type=jnp.float32,
    )


# ---------------------------------------------------------------------------
# Kernels
# ---------------------------------------------------------------------------
def _gram_kernel(feats_ref, gram_ref, *, inv_denom, m_total, tk):
    k = pl.program_id(0)

    @pl.when(k == 0)
    def _():
        gram_ref[...] = jnp.zeros_like(gram_ref)

    # Accumulate directly into the resident output block (f32).
    gram_ref[...] += _partial_gram(_masked_tile(feats_ref, k, tk, m_total))

    @pl.when(k == pl.num_programs(0) - 1)
    def _():
        gram_ref[...] *= inv_denom


def _style_loss_kernel(feats_ref, target_ref, gram_ref, loss_ref, *,
                       inv_denom, inv_mse_denom, m_total, tk):
    k = pl.program_id(0)

    @pl.when(k == 0)
    def _():
        gram_ref[...] = jnp.zeros_like(gram_ref)

    gram_ref[...] += _partial_gram(_masked_tile(feats_ref, k, tk, m_total))

    @pl.when(k == pl.num_programs(0) - 1)
    def _():
        g = gram_ref[...] * inv_denom          # scale once, in the finalize
        gram_ref[...] = g
        diff = g - target_ref[...].astype(jnp.float32)
        loss_ref[0, 0] = jnp.sum(diff * diff) * inv_mse_denom


# ---------------------------------------------------------------------------
# Wrappers (jitted device paths)
# ---------------------------------------------------------------------------
@jax.jit
def gram_matrix(x):
    """Pallas equivalent of the torch gram_matrix helper (f32 output)."""
    a, b, c, d = x.shape
    n, m = a * b, c * d
    feats = x.reshape(n, m)
    itemsize = jnp.dtype(feats.dtype).itemsize
    tk = _choose_tk(n, m, itemsize)
    grid_k = pl.cdiv(m, tk)

    return pl.pallas_call(
        functools.partial(
            _gram_kernel,
            inv_denom=1.0 / float(a * b * c * d),
            m_total=m, tk=tk,
        ),
        grid=(grid_k,),
        in_specs=[pl.BlockSpec((n, tk), lambda k: (0, k))],          # streamed F tiles
        out_specs=pl.BlockSpec((n, n), lambda k: (0, 0)),            # resident accumulator
        out_shape=jax.ShapeDtypeStruct((n, n), jnp.float32),
        compiler_params=pltpu.CompilerParams(
            dimension_semantics=("arbitrary",),
            vmem_limit_bytes=_vmem_limit_bytes(n, tk, itemsize, 1),
        ),
    )(feats)


@jax.jit
def _style_loss_fused(x, target):
    """Fused gram(x) + MSE(gram, target).  Returns (gram, scalar loss)."""
    a, b, c, d = x.shape
    n, m = a * b, c * d
    feats = x.reshape(n, m)
    itemsize = jnp.dtype(feats.dtype).itemsize
    tk = _choose_tk(n, m, itemsize)
    grid_k = pl.cdiv(m, tk)

    gram, loss = pl.pallas_call(
        functools.partial(
            _style_loss_kernel,
            inv_denom=1.0 / float(a * b * c * d),
            inv_mse_denom=1.0 / float(n * n),
            m_total=m, tk=tk,
        ),
        grid=(grid_k,),
        in_specs=[
            pl.BlockSpec((n, tk), lambda k: (0, k)),                  # streamed F tiles
            pl.BlockSpec((n, n), lambda k: (0, 0)),                   # resident target
        ],
        out_specs=(
            pl.BlockSpec((n, n), lambda k: (0, 0)),                   # gram (resident acc)
            pl.BlockSpec(memory_space=pltpu.MemorySpace.SMEM),        # scalar loss
        ),
        out_shape=(
            jax.ShapeDtypeStruct((n, n), jnp.float32),
            jax.ShapeDtypeStruct((1, 1), jnp.float32),
        ),
        compiler_params=pltpu.CompilerParams(
            dimension_semantics=("arbitrary",),
            vmem_limit_bytes=_vmem_limit_bytes(n, tk, itemsize, 2),
        ),
    )(feats, target)
    return gram, loss[0, 0]


class StyleLoss:
    """JAX/Pallas port of the PyTorch StyleLoss module."""

    def __init__(self, target_feature):
        # Target gram is precomputed once (detached constant), like in torch.
        # Note: stored in f32 regardless of input dtype (>= torch precision).
        self.target = gram_matrix(target_feature)
        self.loss = None

    def __call__(self, x):
        gram, loss = _style_loss_fused(x, self.target)
        self.input_gram = gram
        self.loss = loss
        return x  # module passes input through unchanged


# ---------------------------------------------------------------------------
# Reference (pure JAX) for a sanity check
# ---------------------------------------------------------------------------
def _ref_gram(x):
    a, b, c, d = x.shape
    f = x.reshape(a * b, c * d).astype(jnp.float32)
    return (f @ f.T) / (a * b * c * d)


if __name__ == "__main__":
    key = jax.random.PRNGKey(0)
    k_t, k_x = jax.random.split(key)

    # Small NCHW shapes: batch=2, channels=4, spatial=16
    target_feature = jax.random.normal(k_t, (2, 4, 16, 16), dtype=jnp.float32)
    x = jax.random.normal(k_x, (2, 4, 16, 16), dtype=jnp.float32)

    style = StyleLoss(target_feature)
    out = style(x)
    jax.block_until_ready(out)
    jax.block_until_ready(style.loss)
    jax.block_until_ready(style.input_gram)

    # Correctness check vs. pure-JAX reference.
    ref_target = _ref_gram(target_feature)
    ref_gram = _ref_gram(x)
    ref_loss = jnp.mean((ref_gram - ref_target) ** 2)

    assert out.shape == x.shape
    assert jnp.allclose(out, x)
    assert jnp.allclose(style.target, ref_target, atol=1e-5, rtol=1e-5)
    assert jnp.allclose(style.input_gram, ref_gram, atol=1e-5, rtol=1e-5)
    assert jnp.allclose(style.loss, ref_loss, atol=1e-6, rtol=1e-5)

    print("KERNEL_OK")
</pallas_src>

<mosaic_0001>
module attributes {stable_mosaic.version = 11 : i64} {
  func.func @_gram_kernel(%arg0: i32, %arg1: memref<8x256xf32, #tpu.memory_space<vmem>>, %arg2: memref<8x8xf32, #tpu.memory_space<vmem>>) attributes {dimension_semantics = [#tpu.dimension_semantics<arbitrary>], iteration_bounds = array<i64: 1>, scalar_prefetch = 0 : i64, scratch_operands = 0 : i64, tpu.core_type = #tpu.core_type<tc>, window_params = [{transform_indices = @transform_0, window_bounds = array<i64: 8, 256>}, {pipeline_mode = #tpu.pipeline_mode<synchronous>, transform_indices = @transform_1, window_bounds = array<i64: 8, 8>}]} {
    %c0_i32 = arith.constant 0 : i32
    %0 = arith.cmpi eq, %arg0, %c0_i32 : i32
    %1 = arith.extui %0 : i1 to i32
    %c0_i32_0 = arith.constant 0 : i32
    %2 = arith.cmpi ne, %1, %c0_i32_0 : i32
    scf.if %2 {
      %cst_8 = arith.constant 0.000000e+00 : f32
      %11 = vector.broadcast %cst_8 : f32 to vector<8x8xf32>
      %c0_9 = arith.constant 0 : index
      %c0_10 = arith.constant 0 : index
      %12 = vector.load %arg2[%c0_9, %c0_10] : memref<8x8xf32, #tpu.memory_space<vmem>>, vector<8x8xf32>
      tpu.vector_store %arg2[%c0_9, %c0_10], %11 {strides = array<i32>} : memref<8x8xf32, #tpu.memory_space<vmem>>, vector<8x8xf32>,
    } else {
    }
    %c0 = arith.constant 0 : index
    %c0_1 = arith.constant 0 : index
    %3 = vector.load %arg2[%c0, %c0_1] : memref<8x8xf32, #tpu.memory_space<vmem>>, vector<8x8xf32>
    %c0_2 = arith.constant 0 : index
    %c0_3 = arith.constant 0 : index
    %4 = vector.load %arg1[%c0_2, %c0_3] : memref<8x256xf32, #tpu.memory_space<vmem>>, vector<8x256xf32>
    %cst = arith.constant dense<0.000000e+00> : vector<8x8xf32>
    %5 = tpu.matmul %4, %4, %cst {dimension_numbers = #tpu.dot_dimension_numbers<[1], [1], [0], [0], [0, 0, 1, 0], [], []>} : vector<8x256xf32>, vector<8x256xf32>, vector<8x8xf32> -> vector<8x8xf32>
    %6 = arith.addf %3, %5 : vector<8x8xf32>
    %c0_4 = arith.constant 0 : index
    %c0_5 = arith.constant 0 : index
    %7 = vector.load %arg2[%c0_4, %c0_5] : memref<8x8xf32, #tpu.memory_space<vmem>>, vector<8x8xf32>
    tpu.vector_store %arg2[%c0_4, %c0_5], %6 {strides = array<i32>} : memref<8x8xf32, #tpu.memory_space<vmem>>, vector<8x8xf32>,
    %c0_i32_6 = arith.constant 0 : i32
    %8 = arith.cmpi eq, %arg0, %c0_i32_6 : i32
    %9 = arith.extui %8 : i1 to i32
    %c0_i32_7 = arith.constant 0 : i32
    %10 = arith.cmpi ne, %9, %c0_i32_7 : i32
    scf.if %10 {
      %c0_8 = arith.constant 0 : index
      %c0_9 = arith.constant 0 : index
      %11 = vector.load %arg2[%c0_8, %c0_9] : memref<8x8xf32, #tpu.memory_space<vmem>>, vector<8x8xf32>
      %cst_10 = arith.constant 4.8828125E-4 : f32
      %12 = vector.broadcast %cst_10 : f32 to vector<8x8xf32>
      %13 = arith.mulf %11, %12 : vector<8x8xf32>
      %c0_11 = arith.constant 0 : index
      %c0_12 = arith.constant 0 : index
      %14 = vector.load %arg2[%c0_11, %c0_12] : memref<8x8xf32, #tpu.memory_space<vmem>>, vector<8x8xf32>
      tpu.vector_store %arg2[%c0_11, %c0_12], %13 {strides = array<i32>} : memref<8x8xf32, #tpu.memory_space<vmem>>, vector<8x8xf32>,
    } else {
    }
    return
  }
  func.func @transform_0(%arg0: i32) -> (i32, i32) {
    %c0_i32 = arith.constant 0 : i32
    %c0_i32_0 = arith.constant 0 : i32
    return %c0_i32, %arg0 : i32, i32
  }
  func.func @transform_1(%arg0: i32) -> (i32, i32) {
    %c0_i32 = arith.constant 0 : i32
    %c0_i32_0 = arith.constant 0 : i32
    %c0_i32_1 = arith.constant 0 : i32
    return %c0_i32, %c0_i32_0 : i32, i32
  }
}

</mosaic_0001>

<bundles_post_ra>
// kernel: gram_matrix.1
= control target key start
LH: loop header
LB: loop body
LE: loop exit
PB: predicated region body
PF: predicated region fallthrough
CT: control target
= control target key end

     0   :  { %vm13_vm0 = vcmask 64512   ;;  %s159_s0 = inlined_call_operand.vmem [shape: f32[8,256], index: 0, kind: input, shape index: {}]   ;;  %s160_s1 = inlined_call_operand.hbm [shape: f32[8,8], index: 1, kind: output, shape index: {}]  }
   0x1   :  { %v17_v0 = vld [vmem:[%s159_s0 + $0x8] sm:$0xff]  ;;  %v16_v1 = vld [vmem:[%s159_s0] sm:$0xff] }
   0x2   :  { %6 = vsyncpa [#allocation3], 0  ;;  %48 = vmatprep.subr.mxu0 %v17_v0  ;;  %82 = vmatprep.mubr.f32.mxu0 %v17_v0  ;;  %v135_v2 = vmov 0.0   ;;  %s136_s10 = smov [#allocation2]  }
   0x3   :  { %14 = vst.msk [vmem:[#allocation2] sm:$0xff] %vm13_vm0, %v135_v2  ;;  %49 = vmatpush1.xpose.msra.mxu0 %v16_v1  ;;  %s103_s11 = sshll.u32 %s136_s10, 4  ;;  %s104_s11 = int_to_ptr.vmem [resolvable:$true] %s103_s11 }
   0x4   :  { %s113_s0 = scalar_lea.vmem %s104_s11, 128  ;;  %p118_p1 = scmp.lt.s32.totalorder %s104_s11, %s104_s11 }
   0x5   :  { %p114_p0 = scmp.ne.s32.totalorder %s104_s11, %s113_s0  ;;  %p119_p2 = scmp.lt.s32.totalorder %s113_s0, %s113_s0 }
   0x6   :  { %83 = vmatmul.mubr.f32.vlgmr.msra.gmra.mxu0 %v16_v1 }
   0x7   :  { %p120_p3 = por %p119_p2, %p118_p1 }
   0x9   :  { %p121_p4 = pnand %p120_p3, %p114_p0 }
   0xa   :  { %v15_v3 = vld [vmem:[#allocation2] sm:$0xff] }
  0xc6   :  { %v84_v4 = vpop.f32.mrf.mxu0 }
  0xc7   :  { %v88_v5 = vadd.f32 %v84_v4, %v15_v3 }
  0xc8   :  { %v86_v6 = vpop.f32.mrf.mxu0 }
  0xc9   :  { %90 = vst.msk [vmem:[#allocation2] sm:$0xff] %vm13_vm0, %v88_v5 }
  0xd0   :  { %v94_v7 = vld [vmem:[#allocation2] sm:$0xff] }
  0xd1   :  { %v95_v8 = vmul.f32 0.00048828125, %v94_v7 }
  0xd3   :  { %96 = vst.msk [vmem:[#allocation2] sm:$0xff] %vm13_vm0, %v95_v8 }
  0xd4   :  { %124 = shalt.err (!%p121_p4)
}
  0xd5   :  { %106 = dma.vmem_to_hbm [thread:$0]  %s104_s11, 128, %s160_s1, [#allocation3]  }
  0xd6   :  { %133 = dma.done.wait [#allocation3], 128  }
  0xd7   :  { %134 = vsyncadd [#allocation3], 4294967168 }
  0xd8   :  { %110 = vsyncpa [#allocation3], 1 }

</bundles_post_ra>
